<compile_context>
chip_gen: v5e
topology: v5e:2x2
jax: 0.10.0
libtpu: 0.0.40
codegen_flags: <defaults>
</compile_context>

<pallas_src>
import math
import functools

import jax
import jax.numpy as jnp
from jax.experimental import pallas as pl
from jax.experimental.pallas import tpu as pltpu


# ------------------------- generation-dependent VMEM cap -------------------------

_VMEM_LIMIT_CACHE = None


def _vmem_limit_bytes():
    """~85% of physical VMEM (leave headroom for Mosaic scratch), capped at 110 MiB.
    v5e/v6e (128 MiB) -> ~110 MiB; v7x (64 MiB) -> ~54 MiB."""
    global _VMEM_LIMIT_CACHE
    if _VMEM_LIMIT_CACHE is None:
        cap = 128 * 1024 * 1024
        try:
            info = pltpu.get_tpu_info()
            cap = int(getattr(info, "vmem_capacity_bytes", cap)) or cap
        except Exception:
            pass
        _VMEM_LIMIT_CACHE = min(int(cap * 0.85), 110 * 1024 * 1024)
    return _VMEM_LIMIT_CACHE


def _mosaic_params(dim_sem):
    return pltpu.CompilerParams(dimension_semantics=dim_sem,
                                vmem_limit_bytes=_vmem_limit_bytes())


def _tile(dim, target, align):
    """Largest block <= target that divides `dim` and is a multiple of `align`;
    falls back to the full dim (a full-extent block is always legal)."""
    if dim <= target:
        return dim
    t = (target // align) * align
    while t >= align:
        if dim % t == 0:
            return t
        t -= align
    return dim


# ---------------- Fused RMSNorm + per-head QKV projection + RoPE ----------------

def _norm_qkv_rope_kernel(eps, n_rope_heads, half, mxu_dtype,
                          x_ref, g_ref, w_ref, cos_ref, sin_ref, o_ref, xn_ref):
    j = pl.program_id(1)

    # RMSNorm computed once per row block (hoisted out of the per-head loop).
    @pl.when(j == 0)
    def _():
        x = x_ref[...]
        ms = jnp.mean(x * x, axis=-1, keepdims=True)
        xn_ref[...] = x * jax.lax.rsqrt(ms + eps) * g_ref[...]

    xn = xn_ref[...].astype(mxu_dtype)
    p = jnp.dot(xn, w_ref[0].astype(mxu_dtype),
                preferred_element_type=jnp.float32)          # (tm, Dh)
    u1 = p[:, :half]
    u2 = p[:, half:]
    c = cos_ref[...]
    s = sin_ref[...]
    is_rope = j < n_rope_heads                               # rope q & k heads, not v
    o_ref[0, :, :half] = jnp.where(is_rope, u1 * c - u2 * s, u1)
    o_ref[0, :, half:] = jnp.where(is_rope, u1 * s + u2 * c, u2)


def pallas_norm_qkv_rope(x, gamma, wqkv, cos, sin, *, seq_len, n_rope_heads,
                         eps=1e-5, mxu_dtype=jnp.float32, tm=256):
    """RMSNorm(x) projected per head with wqkv (NH, D, Dh) and rotary embedding applied
    (rotate-half form; wq/wk columns were permuted at init) to the first n_rope_heads
    heads.  Output is a head-major (NH, M, Dh) slab -> no XLA transposes downstream."""
    M, D = x.shape
    NH, D2, Dh = wqkv.shape
    assert D == D2 and M % seq_len == 0
    half = Dh // 2
    tm = _tile(seq_len, tm, 8)          # keep row blocks inside one sequence (RoPE rows)
    sblocks = seq_len // tm
    grid = (M // tm, NH)
    return pl.pallas_call(
        functools.partial(_norm_qkv_rope_kernel, eps, n_rope_heads, half, mxu_dtype),
        out_shape=jax.ShapeDtypeStruct((NH, M, Dh), jnp.float32),
        grid_spec=pltpu.PrefetchScalarGridSpec(
            num_scalar_prefetch=0,
            grid=grid,
            in_specs=[
                pl.BlockSpec((tm, D), lambda i, j: (i, 0)),
                pl.BlockSpec((1, D), lambda i, j: (0, 0)),
                pl.BlockSpec((1, D, Dh), lambda i, j: (j, 0, 0)),
                pl.BlockSpec((tm, half), lambda i, j: (i % sblocks, 0)),
                pl.BlockSpec((tm, half), lambda i, j: (i % sblocks, 0)),
            ],
            out_specs=pl.BlockSpec((1, tm, Dh), lambda i, j: (j, i, 0)),
            scratch_shapes=[pltpu.VMEM((tm, D), jnp.float32)],
        ),
        # head axis "arbitrary": the xn scratch is initialized at j == 0.
        compiler_params=_mosaic_params(("parallel", "arbitrary")),
    )(x, gamma.reshape(1, D), wqkv, cos, sin)


# ---------------- Flash attention (KV-tiled, in-kernel mask, GQA via index_map) -----

def _flash_attn_kernel(scale, use_mask, mxu_dtype,
                       q_ref, k_ref, v_ref, o_ref, m_sc, l_sc, acc_sc):
    ki = pl.program_id(2)

    @pl.when(ki == 0)
    def _():
        m_sc[...] = jnp.full(m_sc.shape, -jnp.inf, m_sc.dtype)
        l_sc[...] = jnp.zeros(l_sc.shape, l_sc.dtype)
        acc_sc[...] = jnp.zeros(acc_sc.shape, acc_sc.dtype)

    q = q_ref[0]            # (tq, Dh)
    k = k_ref[0]            # (tkv, Dh)
    v = v_ref[0]            # (tkv, Dh)
    # q @ k^T without materializing a transposed tile (MXU consumes it natively).
    s = jax.lax.dot_general(q.astype(mxu_dtype), k.astype(mxu_dtype),
                            (((1,), (1,)), ((), ())),
                            preferred_element_type=jnp.float32) * scale
    if use_mask:
        # Additive float mask generated in-kernel: +1.0 strictly above the diagonal,
        # exactly like the reference (no HBM mask tensor).
        tq, tkv = s.shape
        row = jax.lax.broadcasted_iota(jnp.int32, (tq, tkv), 0) + pl.program_id(1) * tq
        col = jax.lax.broadcasted_iota(jnp.int32, (tq, tkv), 1) + ki * tkv
        s = s + jnp.where(col > row, 1.0, 0.0).astype(jnp.float32)

    m_prev = m_sc[...]
    m_new = jnp.maximum(m_prev, jnp.max(s, axis=-1, keepdims=True))
    alpha = jnp.exp(m_prev - m_new)
    p = jnp.exp(s - m_new)
    l_sc[...] = alpha * l_sc[...] + jnp.sum(p, axis=-1, keepdims=True)
    acc_sc[...] = alpha * acc_sc[...] + jnp.dot(
        p.astype(mxu_dtype), v.astype(mxu_dtype), preferred_element_type=jnp.float32)
    m_sc[...] = m_new

    @pl.when(ki == pl.num_programs(2) - 1)
    def _():
        # exact division (not approx reciprocal) to stay faithful to the reference
        o_ref[0] = (acc_sc[...] / l_sc[...]).astype(o_ref.dtype)


def pallas_flash_attention(qkv, B, S, H, Hkv, rep, scale, use_mask, *,
                           mxu_dtype=jnp.float32, tq=512, tkv=512):
    """qkv: (H + 2*Hkv, B*S, Dh) head-major slabs.  Query head h reads K slab
    H + h//rep and V slab H + Hkv + h//rep directly through the index_map (GQA without
    jnp.repeat).  Output is head-major (H, B*S, Dh)."""
    NH, M, Dh = qkv.shape
    assert M == B * S
    tq = _tile(S, tq, 8)
    tkv = _tile(S, tkv, 128)
    qb = S // tq
    kb = S // tkv
    grid = (B * H, qb, kb)

    def q_map(bh, i, j):
        return (bh % H, (bh // H) * qb + i, 0)

    def k_map(bh, i, j):
        return (H + (bh % H) // rep, (bh // H) * kb + j, 0)

    def v_map(bh, i, j):
        return (H + Hkv + (bh % H) // rep, (bh // H) * kb + j, 0)

    def o_map(bh, i, j):
        return (bh % H, (bh // H) * qb + i, 0)

    return pl.pallas_call(
        functools.partial(_flash_attn_kernel, scale, use_mask, mxu_dtype),
        out_shape=jax.ShapeDtypeStruct((H, M, Dh), jnp.float32),
        grid_spec=pltpu.PrefetchScalarGridSpec(
            num_scalar_prefetch=0,
            grid=grid,
            in_specs=[
                pl.BlockSpec((1, tq, Dh), q_map),
                pl.BlockSpec((1, tkv, Dh), k_map),
                pl.BlockSpec((1, tkv, Dh), v_map),
            ],
            out_specs=pl.BlockSpec((1, tq, Dh), o_map),
            scratch_shapes=[
                pltpu.VMEM((tq, 1), jnp.float32),      # running max
                pltpu.VMEM((tq, 1), jnp.float32),      # running sum
                pltpu.VMEM((tq, Dh), jnp.float32),     # output accumulator
            ],
        ),
        compiler_params=_mosaic_params(("parallel", "parallel", "arbitrary")),
    )(qkv, qkv, qkv)


# ---------------- Output projection (head-reduction) with fused residual ----------

def _head_proj_res_kernel(mxu_dtype, attn_ref, w_ref, res_ref, o_ref, acc_ref):
    k = pl.program_id(2)

    @pl.when(k == 0)
    def _():
        acc_ref[...] = jnp.zeros_like(acc_ref)

    acc_ref[...] += jnp.dot(attn_ref[0].astype(mxu_dtype), w_ref[0].astype(mxu_dtype),
                            preferred_element_type=jnp.float32)

    @pl.when(k == pl.num_programs(2) - 1)
    def _():
        o_ref[...] = (acc_ref[...] + res_ref[...]).astype(o_ref.dtype)   # fused residual


def pallas_head_proj_residual(attn, wo, res, *, mxu_dtype=jnp.float32, tm=256, tn=256):
    """res + sum_h attn[h] @ wo[h].  attn: (H, M, Dh), wo: (H, Dh, D), res: (M, D)."""
    H, M, Dh = attn.shape
    _, _, D = wo.shape
    tm = _tile(M, tm, 8)
    tn = _tile(D, tn, 128)
    grid = (M // tm, D // tn, H)
    return pl.pallas_call(
        functools.partial(_head_proj_res_kernel, mxu_dtype),
        out_shape=jax.ShapeDtypeStruct((M, D), jnp.float32),
        grid_spec=pltpu.PrefetchScalarGridSpec(
            num_scalar_prefetch=0,
            grid=grid,
            in_specs=[
                pl.BlockSpec((1, tm, Dh), lambda i, j, k: (k, i, 0)),
                pl.BlockSpec((1, Dh, tn), lambda i, j, k: (k, 0, j)),
                pl.BlockSpec((tm, tn), lambda i, j, k: (i, j)),
            ],
            out_specs=pl.BlockSpec((tm, tn), lambda i, j, k: (i, j)),
            scratch_shapes=[pltpu.VMEM((tm, tn), jnp.float32)],
        ),
        compiler_params=_mosaic_params(("parallel", "parallel", "arbitrary")),
    )(attn, wo, res)


# ---------------- Fused RMSNorm + SwiGLU FFN (hidden-tiled) with fused residual ----

def _norm_ffn_res_kernel(eps, mxu_dtype, x_ref, g_ref, w1_ref, w3_ref, w2_ref,
                         o_ref, xn_ref, acc_ref):
    h = pl.program_id(1)

    # Norm hoisted out of the hidden-dim reduction loop.
    @pl.when(h == 0)
    def _():
        x = x_ref[...]
        ms = jnp.mean(x * x, axis=-1, keepdims=True)
        xn_ref[...] = x * jax.lax.rsqrt(ms + eps) * g_ref[...]
        acc_ref[...] = jnp.zeros_like(acc_ref)

    xn = xn_ref[...].astype(mxu_dtype)
    h1 = jnp.dot(xn, w1_ref[...].astype(mxu_dtype), preferred_element_type=jnp.float32)
    h3 = jnp.dot(xn, w3_ref[...].astype(mxu_dtype), preferred_element_type=jnp.float32)
    g = (h1 * jax.nn.sigmoid(h1)) * h3            # SiLU(W1 x) * W3 x, kept in f32
    acc_ref[...] += jnp.dot(g.astype(mxu_dtype), w2_ref[...].astype(mxu_dtype),
                            preferred_element_type=jnp.float32)

    @pl.when(h == pl.num_programs(1) - 1)
    def _():
        o_ref[...] = (acc_ref[...] + x_ref[...]).astype(o_ref.dtype)   # fused residual


def pallas_norm_ffn_residual(x, gamma, w1, w3, w2, *, eps=1e-5,
                             mxu_dtype=jnp.float32, tm=256, th=256):
    """x + W2( SiLU(W1 n(x)) * W3 n(x) ), tiled over the hidden dim; the (M, hid)
    intermediate never touches HBM."""
    M, D = x.shape
    _, hid = w1.shape
    tm = _tile(M, tm, 8)
    th = _tile(hid, th, 128)
    grid = (M // tm, hid // th)
    return pl.pallas_call(
        functools.partial(_norm_ffn_res_kernel, eps, mxu_dtype),
        out_shape=jax.ShapeDtypeStruct((M, D), jnp.float32),
        grid_spec=pltpu.PrefetchScalarGridSpec(
            num_scalar_prefetch=0,
            grid=grid,
            in_specs=[
                pl.BlockSpec((tm, D), lambda i, h: (i, 0)),
                pl.BlockSpec((1, D), lambda i, h: (0, 0)),
                pl.BlockSpec((D, th), lambda i, h: (0, h)),
                pl.BlockSpec((D, th), lambda i, h: (0, h)),
                pl.BlockSpec((th, D), lambda i, h: (h, 0)),
            ],
            out_specs=pl.BlockSpec((tm, D), lambda i, h: (i, 0)),
            scratch_shapes=[pltpu.VMEM((tm, D), jnp.float32),   # normalized x
                            pltpu.VMEM((tm, D), jnp.float32)],  # accumulator
        ),
        compiler_params=_mosaic_params(("parallel", "arbitrary")),
    )(x, gamma.reshape(1, D), w1, w3, w2)


# ---------------- Fused RMSNorm + matmul (final norm + logits projection) ----------

def _norm_matmul_kernel(eps, mxu_dtype, x_ref, g_ref, w_ref, o_ref):
    x = x_ref[...]
    ms = jnp.mean(x * x, axis=-1, keepdims=True)
    xn = (x * jax.lax.rsqrt(ms + eps) * g_ref[...]).astype(mxu_dtype)
    o_ref[...] = jnp.dot(xn, w_ref[...].astype(mxu_dtype),
                         preferred_element_type=jnp.float32)


def pallas_norm_matmul(x, gamma, w, *, eps=1e-5, mxu_dtype=jnp.float32, tm=256, tn=512):
    M, D = x.shape
    D2, N = w.shape
    assert D == D2
    # Pad a non-128-divisible output dim (e.g. vocab) rather than falling back to a
    # full-extent (D, N) weight block that could blow past VMEM.
    Np = N
    if N > 128 and N % 128 != 0:
        Np = ((N + 127) // 128) * 128
        w = jnp.pad(w, ((0, 0), (0, Np - N)))
    tm = _tile(M, tm, 8)
    tn = _tile(Np, tn, 128)
    grid = (M // tm, Np // tn)
    out = pl.pallas_call(
        functools.partial(_norm_matmul_kernel, eps, mxu_dtype),
        out_shape=jax.ShapeDtypeStruct((M, Np), jnp.float32),
        grid_spec=pltpu.PrefetchScalarGridSpec(
            num_scalar_prefetch=0,
            grid=grid,
            in_specs=[
                pl.BlockSpec((tm, D), lambda i, j: (i, 0)),
                pl.BlockSpec((1, D), lambda i, j: (0, 0)),
                pl.BlockSpec((D, tn), lambda i, j: (0, j)),
            ],
            out_specs=pl.BlockSpec((tm, tn), lambda i, j: (i, j)),
        ),
        compiler_params=_mosaic_params(("parallel", "parallel")),
    )(x, gamma.reshape(1, D), w)
    return out[:, :N] if Np != N else out


# ---------------------------- Model glue (plain JAX) ----------------------------

def precompute_rope(model_dimension, seq_limit, head_dim, scaling=10000.0):
    # Faithful to the reference: exponent uses model_dimension, then slices the first
    # head_dim // 2 frequencies.
    freqs = jnp.exp(
        -jnp.arange(0, model_dimension, 2, dtype=jnp.float32)
        * (math.log(scaling) / model_dimension))
    angles = jnp.outer(jnp.arange(seq_limit, dtype=jnp.float32), freqs)
    angles = angles[:, : head_dim // 2]
    return jnp.cos(angles), jnp.sin(angles)


def init_params(key, cfg):
    D, V = cfg["model_dimension"], cfg["vocabular_size"]
    H, Hkv = cfg["number_of_heads"], cfg["number_of_kv_heads"]
    Dh = D // H
    hid = cfg["multiple_of"] * (
        (cfg["hidden_dimension"] + cfg["multiple_of"] - 1) // cfg["multiple_of"])
    wdt = jnp.bfloat16 if cfg.get("use_bf16_mxu", False) else jnp.float32
    keys = jax.random.split(key, 2 + cfg["number_of_layers"])

    def lin(k, fan_in, fan_out):  # torch Linear default init, stored as (in, out)
        bound = 1.0 / math.sqrt(fan_in)
        return jax.random.uniform(k, (fan_in, fan_out), jnp.float32, -bound, bound)

    params = {
        "embedding": jax.random.normal(keys[0], (V, D), jnp.float32),
        "output_w": lin(keys[1], D, V).astype(wdt),
        "final_norm": jnp.ones((D,), jnp.float32),
    }
    cos, sin = precompute_rope(D, cfg["sequence_lenght_limit"], Dh)
    params["rope_cos"], params["rope_sin"] = cos, sin

    # Permute wq/wk columns within each head to [evens | odds] so the interleaved-pair
    # RoPE becomes a rotate-half on contiguous halves in-kernel.  The q.k contraction
    # is permutation-invariant and v is left unpermuted, so the output is unchanged.
    perm = jnp.concatenate([jnp.arange(0, Dh, 2), jnp.arange(1, Dh, 2)])

    layers = []
    for l in range(cfg["number_of_layers"]):
        lk = jax.random.split(keys[2 + l], 7)
        wq = lin(lk[0], D, H * Dh).reshape(D, H, Dh).transpose(1, 0, 2)[:, :, perm]
        wk = lin(lk[1], D, Hkv * Dh).reshape(D, Hkv, Dh).transpose(1, 0, 2)[:, :, perm]
        wv = lin(lk[2], D, Hkv * Dh).reshape(D, Hkv, Dh).transpose(1, 0, 2)
        layers.append(dict(
            wqkv=jnp.concatenate([wq, wk, wv], axis=0).astype(wdt),  # (H+2Hkv, D, Dh)
            wo=lin(lk[3], H * Dh, D).reshape(H, Dh, D).astype(wdt),  # head-major slabs
            w1=lin(lk[4], D, hid).astype(wdt),
            w3=lin(lk[5], D, hid).astype(wdt),
            w2=lin(lk[6], hid, D).astype(wdt),
            attn_norm_w=jnp.ones((D,), jnp.float32),
            ffn_norm_w=jnp.ones((D,), jnp.float32),
        ))
    params["layers"] = layers
    return params


def decoder_forward(lp, x2d, cos, sin, cfg, B, S, use_mask, mxu_dtype):
    D = cfg["model_dimension"]
    H, Hkv = cfg["number_of_heads"], cfg["number_of_kv_heads"]
    Dh = D // H
    rep = H // Hkv

    # Fused RMSNorm + per-head QKV projection + RoPE -> head-major (H+2Hkv, B*S, Dh).
    qkv = pallas_norm_qkv_rope(x2d, lp["attn_norm_w"], lp["wqkv"], cos, sin,
                               seq_len=S, n_rope_heads=H + Hkv, mxu_dtype=mxu_dtype)
    # TODO(synk): persistent KV cache for start_position > 0 (identity at 0).
    attn = pallas_flash_attention(qkv, B, S, H, Hkv, rep,
                                  1.0 / math.sqrt(Dh), use_mask, mxu_dtype=mxu_dtype)
    # x + attn @ Wo (reduction over heads), residual fused into the writeback.
    h2d = pallas_head_proj_residual(attn, lp["wo"], x2d, mxu_dtype=mxu_dtype)
    # h + FFN(RMSNorm(h)), hidden-dim tiled, residual fused into the writeback.
    return pallas_norm_ffn_residual(h2d, lp["ffn_norm_w"], lp["w1"], lp["w3"], lp["w2"],
                                    mxu_dtype=mxu_dtype)


def transformer_forward(params, tokens, start_position, cfg):
    B, S = tokens.shape
    D, V = cfg["model_dimension"], cfg["vocabular_size"]
    mxu_dtype = jnp.bfloat16 if cfg.get("use_bf16_mxu", False) else jnp.float32

    # TODO(synk): start_position > 0 needs a persistent KV cache; only 0 is supported.
    assert start_position == 0

    x2d = params["embedding"][tokens].reshape(B * S, D)

    # Causal (+1.0 above diagonal, per the reference) mask is generated inside the
    # attention kernel via iota; nothing is materialized in HBM.
    use_mask = S > 1

    cos = params["rope_cos"][start_position:start_position + S]
    sin = params["rope_sin"][start_position:start_position + S]

    # TODO(synk): stack layer weights + lax.scan / cross-call prefetch (P10) so layer
    # l+1 weight DMAs overlap layer l compute.
    for lp in params["layers"]:
        x2d = decoder_forward(lp, x2d, cos, sin, cfg, B, S, use_mask, mxu_dtype)

    # Final RMSNorm fused into the logits projection.
    logits = pallas_norm_matmul(x2d, params["final_norm"], params["output_w"],
                                mxu_dtype=mxu_dtype)
    return logits.reshape(B, S, V)


if __name__ == "__main__":
    cfg = dict(
        number_of_layers=2,
        vocabular_size=64,
        model_dimension=32,
        hidden_dimension=64,
        number_of_heads=4,
        number_of_kv_heads=2,
        batch_size_limit=2,
        sequence_lenght_limit=16,
        multiple_of=32,
        use_bf16_mxu=False,   # keep f32 MXU by default for reference-faithful numerics
    )
    params = init_params(jax.random.PRNGKey(0), cfg)
    tokens = jax.random.randint(
        jax.random.PRNGKey(1), (2, 8), 0, cfg["vocabular_size"], dtype=jnp.int32)
    logits = transformer_forward(params, tokens, start_position=0, cfg=cfg)
    jax.block_until_ready(logits)
    assert logits.shape == (2, 8, cfg["vocabular_size"])
    print("KERNEL_OK")
</pallas_src>

<mosaic_0001>
module attributes {stable_mosaic.version = 11 : i64} {
  func.func @_norm_qkv_rope_kernel(%arg0: i32, %arg1: i32, %arg2: memref<8x32xf32, #tpu.memory_space<vmem>>, %arg3: memref<1x32xf32, #tpu.memory_space<vmem>>, %arg4: memref<1x32x8xf32, #tpu.memory_space<vmem>>, %arg5: memref<8x4xf32, #tpu.memory_space<vmem>>, %arg6: memref<8x4xf32, #tpu.memory_space<vmem>>, %arg7: memref<1x8x8xf32, #tpu.memory_space<vmem>>, %arg8: memref<8x32xf32, #tpu.memory_space<vmem>>) attributes {dimension_semantics = [#tpu.dimension_semantics<parallel>, #tpu.dimension_semantics<arbitrary>], iteration_bounds = array<i64: 2, 8>, scalar_prefetch = 0 : i64, scratch_operands = 1 : i64, tpu.core_type = #tpu.core_type<tc>, window_params = [{transform_indices = @transform_0, window_bounds = array<i64: 8, 32>}, {pipeline_mode = #tpu.pipeline_mode<synchronous>, transform_indices = @transform_1, window_bounds = array<i64: 1, 32>}, {transform_indices = @transform_2, window_bounds = array<i64: 1, 32, 8>}, {transform_indices = @transform_3, window_bounds = array<i64: 8, 4>}, {transform_indices = @transform_4, window_bounds = array<i64: 8, 4>}, {transform_indices = @transform_5, window_bounds = array<i64: 1, 8, 8>}]} {
    %c0_i32 = arith.constant 0 : i32
    %0 = arith.cmpi eq, %arg1, %c0_i32 : i32
    %1 = arith.extui %0 : i1 to i32
    %c0_i32_0 = arith.constant 0 : i32
    %2 = arith.cmpi ne, %1, %c0_i32_0 : i32
    scf.if %2 {
      %c0_14 = arith.constant 0 : index
      %c0_15 = arith.constant 0 : index
      %26 = vector.load %arg2[%c0_14, %c0_15] : memref<8x32xf32, #tpu.memory_space<vmem>>, vector<8x32xf32>
      %27 = arith.mulf %26, %26 : vector<8x32xf32>
      %cst_16 = arith.constant dense<0.000000e+00> : vector<8xf32>
      %28 = vector.multi_reduction <add>, %27, %cst_16 [1] : vector<8x32xf32> to vector<8xf32>
      %29 = vector.shape_cast %28 : vector<8xf32> to vector<8x1xf32>
      %cst_17 = arith.constant 3.200000e+01 : f32
      %30 = vector.broadcast %cst_17 : f32 to vector<8x1xf32>
      %31 = arith.divf %29, %30 : vector<8x1xf32>
      %cst_18 = arith.constant 9.99999974E-6 : f32
      %32 = vector.broadcast %cst_18 : f32 to vector<8x1xf32>
      %33 = arith.addf %31, %32 : vector<8x1xf32>
      %34 = math.rsqrt %33 : vector<8x1xf32>
      %35 = vector.broadcast %34 : vector<8x1xf32> to vector<8x32xf32>
      %36 = arith.mulf %26, %35 : vector<8x32xf32>
      %c0_19 = arith.constant 0 : index
      %c0_20 = arith.constant 0 : index
      %37 = vector.load %arg3[%c0_19, %c0_20] : memref<1x32xf32, #tpu.memory_space<vmem>>, vector<1x32xf32>
      %38 = vector.broadcast %37 : vector<1x32xf32> to vector<8x32xf32>
      %39 = arith.mulf %36, %38 : vector<8x32xf32>
      %c0_21 = arith.constant 0 : index
      %c0_22 = arith.constant 0 : index
      %40 = vector.load %arg8[%c0_21, %c0_22] : memref<8x32xf32, #tpu.memory_space<vmem>>, vector<8x32xf32>
      tpu.vector_store %arg8[%c0_21, %c0_22], %39 {strides = array<i32>} : memref<8x32xf32, #tpu.memory_space<vmem>>, vector<8x32xf32>,
    } else {
    }
    %c0 = arith.constant 0 : index
    %c0_1 = arith.constant 0 : index
    %3 = vector.load %arg8[%c0, %c0_1] : memref<8x32xf32, #tpu.memory_space<vmem>>, vector<8x32xf32>
    %c0_2 = arith.constant 0 : index
    %c0_3 = arith.constant 0 : index
    %c0_4 = arith.constant 0 : index
    %4 = vector.load %arg4[%c0_2, %c0_3, %c0_4] : memref<1x32x8xf32, #tpu.memory_space<vmem>>, vector<1x32x8xf32>
    %5 = vector.shape_cast %4 : vector<1x32x8xf32> to vector<32x8xf32>
    %cst = arith.constant dense<0.000000e+00> : vector<8x8xf32>
    %6 = tpu.matmul %3, %5, %cst {dimension_numbers = #tpu.dot_dimension_numbers<[1], [0], [0], [1], [0, 0, 1, 1], [], []>} : vector<8x32xf32>, vector<32x8xf32>, vector<8x8xf32> -> vector<8x8xf32>
    %7 = vector.extract_strided_slice %6 {offsets = [0, 0], sizes = [8, 4], strides = [1, 1]} : vector<8x8xf32> to vector<8x4xf32>
    %8 = vector.extract_strided_slice %6 {offsets = [0, 4], sizes = [8, 4], strides = [1, 1]} : vector<8x8xf32> to vector<8x4xf32>
    %c0_5 = arith.constant 0 : index
    %c0_6 = arith.constant 0 : index
    %9 = vector.load %arg5[%c0_5, %c0_6] : memref<8x4xf32, #tpu.memory_space<vmem>>, vector<8x4xf32>
    %c0_7 = arith.constant 0 : index
    %c0_8 = arith.constant 0 : index
    %10 = vector.load %arg6[%c0_7, %c0_8] : memref<8x4xf32, #tpu.memory_space<vmem>>, vector<8x4xf32>
    %c6_i32 = arith.constant 6 : i32
    %11 = arith.cmpi slt, %arg1, %c6_i32 : i32
    %12 = arith.mulf %7, %9 : vector<8x4xf32>
    %13 = arith.mulf %8, %10 : vector<8x4xf32>
    %14 = arith.subf %12, %13 : vector<8x4xf32>
    %15 = arith.select %11, %14, %7 : vector<8x4xf32>
    %c0_9 = arith.constant 0 : index
    %c0_10 = arith.constant 0 : index
    %c0_11 = arith.constant 0 : index
    %16 = vector.load %arg7[%c0_9, %c0_10, %c0_11] : memref<1x8x8xf32, #tpu.memory_space<vmem>>, vector<1x8x4xf32>
    %17 = vector.shape_cast %16 : vector<1x8x4xf32> to vector<8x4xf32>
    %18 = vector.shape_cast %15 : vector<8x4xf32> to vector<1x8x4xf32>
    tpu.vector_store %arg7[%c0_9, %c0_10, %c0_11], %18 {strides = array<i32>} : memref<1x8x8xf32, #tpu.memory_space<vmem>>, vector<1x8x4xf32>,
    %19 = arith.mulf %7, %10 : vector<8x4xf32>
    %20 = arith.mulf %8, %9 : vector<8x4xf32>
    %21 = arith.addf %19, %20 : vector<8x4xf32>
    %22 = arith.select %11, %21, %8 : vector<8x4xf32>
    %c0_12 = arith.constant 0 : index
    %c0_13 = arith.constant 0 : index
    %c4 = arith.constant 4 : index
    %23 = vector.load %arg7[%c0_12, %c0_13, %c4] : memref<1x8x8xf32, #tpu.memory_space<vmem>>, vector<1x8x4xf32>
    %24 = vector.shape_cast %23 : vector<1x8x4xf32> to vector<8x4xf32>
    %25 = vector.shape_cast %22 : vector<8x4xf32> to vector<1x8x4xf32>
    tpu.vector_store %arg7[%c0_12, %c0_13, %c4], %25 {strides = array<i32>} : memref<1x8x8xf32, #tpu.memory_space<vmem>>, vector<1x8x4xf32>,
    return
  }
  func.func @transform_0(%arg0: i32, %arg1: i32) -> (i32, i32) {
    %c0_i32 = arith.constant 0 : i32
    %c0_i32_0 = arith.constant 0 : i32
    return %arg0, %c0_i32 : i32, i32
  }
  func.func @transform_1(%arg0: i32, %arg1: i32) -> (i32, i32) {
    %c0_i32 = arith.constant 0 : i32
    %c0_i32_0 = arith.constant 0 : i32
    %c0_i32_1 = arith.constant 0 : i32
    return %c0_i32, %c0_i32_0 : i32, i32
  }
  func.func @transform_2(%arg0: i32, %arg1: i32) -> (i32, i32, i32) {
    %c0_i32 = arith.constant 0 : i32
    %c0_i32_0 = arith.constant 0 : i32
    %c0_i32_1 = arith.constant 0 : i32
    return %arg1, %c0_i32, %c0_i32_0 : i32, i32, i32
  }
  func.func @transform_3(%arg0: i32, %arg1: i32) -> (i32, i32) {
    %c1_i32 = arith.constant 1 : i32
    %c0_i32 = arith.constant 0 : i32
    %0 = arith.cmpi eq, %c1_i32, %c0_i32 : i32
    %c1_i32_0 = arith.constant 1 : i32
    %1 = arith.select %0, %c1_i32_0, %c1_i32 : i32
    %2 = arith.remsi %arg0, %1 : i32
    %c0_i32_1 = arith.constant 0 : i32
    %3 = arith.cmpi ne, %2, %c0_i32_1 : i32
    %c0_i32_2 = arith.constant 0 : i32
    %4 = arith.cmpi slt, %2, %c0_i32_2 : i32
    %c0_i32_3 = arith.constant 0 : i32
    %5 = arith.cmpi slt, %1, %c0_i32_3 : i32
    %6 = arith.xori %4, %5 : i1
    %7 = arith.andi %6, %3 : i1
    %8 = arith.addi %2, %1 : i32
    %9 = arith.select %7, %8, %2 : i32
    %c0_i32_4 = arith.constant 0 : i32
    %c0_i32_5 = arith.constant 0 : i32
    return %9, %c0_i32_4 : i32, i32
  }
  func.func @transform_4(%arg0: i32, %arg1: i32) -> (i32, i32) {
    %c1_i32 = arith.constant 1 : i32
    %c0_i32 = arith.constant 0 : i32
    %0 = arith.cmpi eq, %c1_i32, %c0_i32 : i32
    %c1_i32_0 = arith.constant 1 : i32
    %1 = arith.select %0, %c1_i32_0, %c1_i32 : i32
    %2 = arith.remsi %arg0, %1 : i32
    %c0_i32_1 = arith.constant 0 : i32
    %3 = arith.cmpi ne, %2, %c0_i32_1 : i32
    %c0_i32_2 = arith.constant 0 : i32
    %4 = arith.cmpi slt, %2, %c0_i32_2 : i32
    %c0_i32_3 = arith.constant 0 : i32
    %5 = arith.cmpi slt, %1, %c0_i32_3 : i32
    %6 = arith.xori %4, %5 : i1
    %7 = arith.andi %6, %3 : i1
    %8 = arith.addi %2, %1 : i32
    %9 = arith.select %7, %8, %2 : i32
    %c0_i32_4 = arith.constant 0 : i32
    %c0_i32_5 = arith.constant 0 : i32
    return %9, %c0_i32_4 : i32, i32
  }
  func.func @transform_5(%arg0: i32, %arg1: i32) -> (i32, i32, i32) {
    %c0_i32 = arith.constant 0 : i32
    %c0_i32_0 = arith.constant 0 : i32
    return %arg1, %arg0, %c0_i32 : i32, i32, i32
  }
}

</mosaic_0001>

<bundles_post_ra>
// kernel: tpu_custom_call.1
= control target key start
LH: loop header
LB: loop body
LE: loop exit
PB: predicated region body
PF: predicated region fallthrough
CT: control target
= control target key end

     0   :  { %s597_s18 = smov 0   ;;  %s599_s19 = smov 0   ;;  %s681_s0 = inlined_call_operand.vmem [shape: f32[16,32], index: 0, kind: input, shape index: {}]   ;;  %s682_s1 = inlined_call_operand.vmem [shape: f32[1,32], index: 1, kind: input, shape index: {}]   ;;  %s683_s2 = inlined_call_operand.vmem [shape: f32[8,32,8], index: 2, kind: input, shape index: {}]   ;;  %s684_s3 = inlined_call_operand.vmem [shape: f32[8,4], index: 3, kind: input, shape index: {}]   ;;  %s685_s4 = inlined_call_operand.vmem [shape: f32[8,4], index: 4, kind: input, shape index: {}]   ;;  %s686_s5 = inlined_call_operand.vmem [shape: f32[8,16,8], index: 5, kind: output, shape index: {}]  }
   0x1   :  { %s601_s20 = smov 0   ;;  %s603_s21 = smov 0  }
   0x2   :  { %s605_s22 = smov 0  }
   0x3 LB: > { %s24_s23 = sadd.s32 1, %s554_s20  ;;  %s27_s24 = sadd.s32 1, %s558_s21  ;;  %s562_s22 = sphi %s605_s22, %s15_s22   ;;  %s558_s21 = sphi %s603_s21, %s690_s21   ;;  %s554_s20 = sphi %s601_s20, %s689_s20   ;;  %s550_s19 = sphi %s599_s19, %s688_s19   ;;  %s546_s18 = sphi %s597_s18, %s687_s18  }
   0x4   : > { %p25_p0 = scmp.ge.s32.totalorder %s24_s23, 8  ;;  %p465_p1 = scmp.ge.s32.totalorder %s562_s22, 1 }
   0x5   : > { %p210_p2 = scmp.lt.s32.totalorder %s562_s22, 17 }
   0x6   : > { %s692_s23 = smov (%p25_p0, %s24_s23), 0  ;;  %s694_s24 = smov (!%p25_p0, %s27_s24), %s558_s21 }
   0x7   : > { %p211_p3 = pnand %p465_p1, %p210_p2  ;;  %p29_p4 = scmp.ge.s32.totalorder %s694_s24, 2 }
   0x8   : > { %p245_p5 = scmp.lt.s32.totalorder (!%p211_p3), %s550_s19, 1  ;;  %p249_p6 = scmp.lt.s32.totalorder (!%p211_p3), %s546_s18, 7 }
   0x9   : > { %s696_s24 = smov (%p29_p4, %s694_s24), 0  ;;  %214 = sbr.rel (%p211_p3) target bundleno = 523 (0x20b), region = 40 }
   0xa   : > { %p471_p7 = scmp.ne.s32.totalorder (!%p211_p3), %s546_s18, 0 }
   0xe   : > { %s698_s19 = smov (!%p245_p5, %s550_s19), 1 }
   0xf   : > { %s250_s25 = scalar_select %p249_p6, %s546_s18, 7 }
  0x10   : > { %s466_s26 = sshll.u32 %s698_s19, 3 }
  0x11   : > { %s248_s29 = scalar_lea.vmem %s681_s0, %s466_s26  ;;  %s475_s30 = sshll.u32 %s250_s25, 5 }
  0x12   : > { %s637_s8 = scalar_lea.vmem %s683_s2, %s475_s30  ;;  %s469_s9 = sshll.u32 %s250_s25, 1 }
  0x13   : > { %s259_s10 = sadd.s32 %s469_s9, %s698_s19  ;;  %265 = sbr.rel (%p471_p7) target bundleno = 171 (0xab), region = 44 }
  0x14   : > { %s470_s11 = sshll.u32 %s259_s10, 3 }
  0x15   : > { %s642_s14 = scalar_lea.vmem %s686_s5, %s470_s11 }
  0x18   : > { %v266_v0 = vld [vmem:[%s248_s29] sm:$0xff]  ;;  %vm268_vm0 = vcmask 261120   ;;  %v564_v3 = vmov 32.0  }
  0x19   : > { %v267_v1 = vmul.f32 %v266_v0, %v266_v0  ;;  %520 = vrcp.f32 %v564_v3  ;;  %v519_v19 = vld [vmem:[%s682_s1] ss:$0 sm:$0xff] }
  0x1b   : > { %v269_v2 = vsel %vm268_vm0, %v267_v1, 0.0 }
  0x1c   : > { %270 = vadd.xlane.f32.xlu0 %v269_v2 }
  0x1f   : > { %v521_v4 = vpop.eup %520 }
  0x20   : > { %v273_v5 = vmul.f32 32.0, %v521_v4  ;;  %vm277_vm1 = vweird.f32 %v521_v4 }
  0x22   : > { %v274_v6 = vsub.f32 1.0, %v273_v5 }
  0x24   : > { %v275_v7 = vmul.f32 %v521_v4, %v274_v6 }
  0x26   : > { %v276_v8 = vadd.f32 %v521_v4, %v275_v7 }
  0x28   : > { %v278_v9 = vsel %vm277_vm1, %v521_v4, %v276_v8 }
  0x8f   : > { %v271_v10 = vpop.xlane.xlu0 %270 }
  0x90   : > { %v279_v11 = vmul.f32 %v278_v9, %v271_v10 }
  0x92   : > { %v280_v12 = vadd.f32 1e-05, %v279_v11 }
  0x94   : > { %522 = vrsqrt.f32 %v280_v12  ;;  %vm287_vm3 = vweird.f32 %v280_v12 }
  0x9a   : > { %v523_v13 = vpop.eup %522 }
  0x9b   : > { %v282_v14 = vmul.f32 %v523_v13, %v280_v12  ;;  %vm288_vm2 = vweird.f32 %v523_v13 }
  0x9c   : > { %vm289_vm4 = vmor %vm287_vm3, %vm288_vm2 }
  0x9d   : > { %v283_v15 = vmul.f32 %v523_v13, %v282_v14 }
  0x9f   : > { %v284_v16 = vmul.f32 0.5, %v283_v15 }
  0xa1   : > { %v285_v17 = vsub.f32 1.5, %v284_v16 }
  0xa3   : > { %v286_v18 = vmul.f32 %v523_v13, %v285_v17 }
  0xa5   : > { %v290_v20 = vsel %vm289_vm4, %v523_v13, %v286_v18 }
  0xa6   : > { %v291_v21 = vmul.f32 %v290_v20, %v266_v0 }
  0xa8   : > { %v296_v22 = vmul.f32 %v519_v19, %v291_v21 }
  0xaa   : > { %297 = vst.msk [vmem:[#allocation2] sm:$0xff] %vm268_vm0, %v296_v22 }
  0xab PF: > { %v302_v23 = vld [vmem:[%s637_s8 + $0x18] sm:$0xff]  ;;  %v301_v24 = vld [vmem:[%s637_s8 + $0x10] sm:$0xff]  ;;  %v327_v25 = vld [vmem:[%s684_s3] sm:$0xff]  ;;  %s565_s25 = smov 4   ;;  %vm303_vm5 = vcmask 261120   ;;  %s566_s28 = smov 124  }
  0xac   : > { %319 = vmatpush.msra.mxu0 %v302_v23  ;;  %v300_v26 = vld [vmem:[%s637_s8 + $0x8] sm:$0xff]  ;;  %349 = vrot.lane.b32.xlu0 %v327_v25, %s565_s25  ;;  %v299_v27 = vld [vmem:[%s637_s8] sm:$0xff]  ;;  %p329_p8 = scmp.lt.s32.totalorder %s546_s18, 6  ;;  %vm345_vm7 = vcmask 31744   ;;  %vm367_vm8 = vcmask 64544  }
  0xad   : > { %v328_v29 = vld [vmem:[%s685_s4] sm:$0xff] }
  0xae   : > { %320 = vmatpush.msra.mxu0 %v301_v24  ;;  %s341_s29 = scalar_select %p329_p8, 1, 0 }
  0xb0   : > { %321 = vmatpush.msra.mxu0 %v300_v26  ;;  %v342_v35 = vstv %s341_s29 }
  0xb1   : > { %v298_v28 = vld [vmem:[#allocation2] sm:$0xff]  ;;  %vm343_vm6 = vcmp.eq.s32.totalorder %v342_v35, 1 }
  0xb2   : > { %322 = vmatpush.msra.mxu0 %v299_v27 }
  0xb3   : > { %472 = vmatmul.msk.f32.vlgmr.msra.gmra.mxu0 %vm303_vm5, %v298_v28 }
  0xb4   : > { %332 = vrot.lane.b32.xlu0 %v328_v29, %s565_s25 }
 0x11e   : > { %v350_v30 = vpop.permute.xlu0 %349 }
 0x126   : > { %v333_v31 = vpop.permute.xlu0 %332 }
 0x130   : > { %v324_v32 = vpop.f32.mrf.mxu0 }
 0x131   : > { %v352_v33 = vmul.f32 %v350_v30, %v324_v32  ;;  %v335_v34 = vmul.f32 %v333_v31, %v324_v32  ;;  %v330_v36 = vmul.f32 %v327_v25, %v324_v32  ;;  %v347_v41 = vmul.f32 %v328_v29, %v324_v32 }
 0x133   : > { %354 = vrot.lane.b32.xlu1 %v352_v33, %s566_s28  ;;  %337 = vrot.lane.b32.xlu2 %v335_v34, %s566_s28 }
 0x13b   : > { %359 = vrot.lane.b32.xlu1 %v324_v32, %s566_s28 }
 0x18d   : > { %v338_v37 = vpop.permute.xlu2 %337 }
 0x18e   : > { %v340_v38 = vsub.f32 %v330_v36, %v338_v37 }
 0x190   : > { %v344_v39 = vsel %vm343_vm6, %v340_v38, %v324_v32 }
 0x191   : > { %346 = vst.msk [vmem:[%s642_s14] sm:$0xff] %vm345_vm7, %v344_v39 }
 0x1a5   : > { %v355_v40 = vpop.permute.xlu1 %354 }
 0x1a6   : > { %v357_v42 = vadd.f32 %v355_v40, %v347_v41 }
 0x1ad   : > { %v360_v43 = vpop.permute.xlu1 %359 }
 0x1ae   : > { %v362_v44 = vsel %vm343_vm6, %v357_v42, %v360_v43 }
 0x1af   : > { %364 = vrot.lane.b32.xlu2 %v362_v44, %s565_s25 }
 0x209   : > { %v365_v45 = vpop.permute.xlu2 %364 }
 0x20a   : > { %368 = vst.msk [vmem:[%s642_s14] sm:$0xff] %vm367_vm8, %v365_v45 }
 0x20b PF: > { %s15_s22 = sadd.s32 1, %s562_s22   ;;  %s687_s18 = smov %s554_s20 }
 0x20c   : > { %p12_p9 = scmp.ge.s32.totalorder %s15_s22, 18   ;;  %s688_s19 = smov %s558_s21 }
 0x20d   : > { %s689_s20 = smov %s692_s23  ;;  %s690_s21 = smov %s696_s24 }
 0x20e   :  { %14 = sbr.rel (!%p12_p9) target bundleno = 3 (0x3), region = 77 }

</bundles_post_ra>
